<compile_context>
chip_gen: v7x
topology: tpu7x:2x2x1
jax: 0.10.0
libtpu: 0.0.40
codegen_flags: <defaults>
</compile_context>

<pallas_src>
import jax
import jax.numpy as jnp
from jax.experimental import pallas as pl
from jax.experimental.pallas import tpu as pltpu


def _pick_c_block(C, B):
    """Output-channel rows handled per grid step.

    Full C by default (maximizes the stacked-matmul M dim and amortizes the
    ~0.35us per-grid-step overhead).  For very large C fall back to 256/128-row
    blocks (still MXU-filling through the 3x stacking).  Never below 16 (bf16
    sublane packing).  When B == 1, split the channel axis so the grid exposes
    >= 2 parallel steps (v7x has two TensorCores).
    """
    cb = C
    if C > 512:
        for blk in (256, 128):
            if C % blk == 0:
                cb = blk
                break
    if B == 1 and cb == C:
        for blk in (C // 2, C // 4):
            if blk >= 16 and blk % 16 == 0 and C % blk == 0:
                cb = blk
                break
    return cb


def _vmem_limit_bytes():
    """min(96 MiB, 3/4 physical VMEM); conservative 48 MiB if the query fails."""
    try:
        cap = int(pltpu.get_tpu_info().vmem_capacity_bytes)
    except Exception:
        cap = None
    if cap is None or cap <= 0:
        return 48 * 1024 * 1024  # safe on every generation (v7x TC = 64 MiB)
    return min(96 * 1024 * 1024, (cap * 3) // 4)


# --------------------------------------------------------------------------
# Fused kernel wrapper
# --------------------------------------------------------------------------
def flip_attention(feature, flipped, wq, bq, wk, bk, wv, bv):
    B, C, H, W = feature.shape
    HW = H * W
    cb = _pick_c_block(C, B)
    n_cblk = C // cb

    # Flat, lane-dense layout (free row-major reshape at the XLA/HBM level).
    feat_flat = feature.reshape(B, C, HW)
    flip_flat = flipped.reshape(B, C, HW)

    # Stack Wq_feat / Wk / Wv per channel block -> one (3*cb, C) MXU LHS per step.
    wq_f = wq[:, :C].astype(jnp.bfloat16).reshape(n_cblk, cb, C)
    wk_b = wk.astype(jnp.bfloat16).reshape(n_cblk, cb, C)
    wv_b = wv.astype(jnp.bfloat16).reshape(n_cblk, cb, C)
    w_stk = jnp.concatenate([wq_f, wk_b, wv_b], axis=1)          # (n_cblk, 3cb, C) bf16
    wq_x = wq[:, C:].astype(jnp.bfloat16)                        # (C, C) bf16

    b_stk = jnp.concatenate(
        [bq.reshape(n_cblk, cb, 1),
         bk.reshape(n_cblk, cb, 1),
         bv.reshape(n_cblk, cb, 1)], axis=1).astype(jnp.float32)  # (n_cblk, 3cb, 1)

    def fused_kernel(feat_ref, flip_ref, wstk_ref, wqx_ref, bstk_ref, out_ref):
        j = pl.program_id(1)

        feat2d = feat_ref.at[0]                        # (C, HW) f32 ref view
        x = feat2d[...].astype(jnp.bfloat16)           # MXU operand (cheap VPU cast)
        xf = flip_ref[0].astype(jnp.bfloat16)          # (C, HW) bf16

        # One stacked 1x1-conv matmul: rows [0,cb)=Q_feat, [cb,2cb)=K, [2cb,3cb)=V.
        qkv = (jnp.dot(wstk_ref[0], x, preferred_element_type=jnp.float32)
               + bstk_ref[0])
        # Q additionally mixes the flipped slab (wq[:, C:] @ flipped).
        q = qkv[0 * cb:1 * cb] + jnp.dot(wqx_ref[...], xf,
                                         preferred_element_type=jnp.float32)
        k = qkv[1 * cb:2 * cb]
        v = qkv[2 * cb:3 * cb]

        # Channel-batched spatial attention (Q^T K per channel), f32 softmax.
        qb = q.astype(jnp.bfloat16).reshape(cb, H, W)
        kb = k.astype(jnp.bfloat16).reshape(cb, H, W)
        vb = v.astype(jnp.bfloat16).reshape(cb, H, W)

        att = jnp.einsum('chw,chv->cwv', qb, kb,
                         preferred_element_type=jnp.float32)      # (cb, W, W)
        att = att - jnp.max(att, axis=-1, keepdims=True)
        e = jnp.exp(att)
        p = (e * pl.reciprocal(jnp.sum(e, axis=-1, keepdims=True),
                               approx=True)).astype(jnp.bfloat16)

        out = jnp.einsum('chw,cwv->chv', vb, p,
                         preferred_element_type=jnp.float32)      # (cb, H, W)

        # Residual add against the f32 rows of the already-resident feature
        # slab (no extra HBM read), stored lane-dense in the flat layout.
        row0 = pl.multiple_of(j * cb, cb)
        res = feat2d[pl.ds(row0, cb), :]                          # (cb, HW) f32
        out_ref[0] = (res + out.reshape(cb, HW)).astype(out_ref.dtype)

    # Full-C input slabs: their block index only changes with the batch axis,
    # so Pallas fetches them once per batch step and reuses them across the
    # inner channel-block axis.
    slab = pl.BlockSpec((1, C, HW), lambda b, j: (b, 0, 0))
    wstk_spec = pl.BlockSpec((1, 3 * cb, C), lambda b, j: (j, 0, 0))
    wqx_spec = pl.BlockSpec((cb, C), lambda b, j: (j, 0))
    bstk_spec = pl.BlockSpec((1, 3 * cb, 1), lambda b, j: (j, 0, 0))
    out_spec = pl.BlockSpec((1, cb, HW), lambda b, j: (b, j, 0))

    out_flat = pl.pallas_call(
        fused_kernel,
        out_shape=jax.ShapeDtypeStruct((B, C, HW), feature.dtype),
        grid=(B, n_cblk),
        in_specs=[slab, slab, wstk_spec, wqx_spec, bstk_spec],
        out_specs=out_spec,
        compiler_params=pltpu.CompilerParams(
            dimension_semantics=("parallel", "parallel"),
            vmem_limit_bytes=_vmem_limit_bytes()),
    )(feat_flat, flip_flat, w_stk, wq_x, b_stk)

    # Free row-major reshape back to NCHW.
    return out_flat.reshape(B, C, H, W)


# --------------------------------------------------------------------------
# Pure-JAX reference (replica of the PyTorch forward) for verification.
# --------------------------------------------------------------------------
def reference(feature, flipped, wq, bq, wk, bk, wv, bv):
    concat = jnp.concatenate([feature, flipped], axis=1)                      # (B, 2C, H, W)
    Q = jnp.einsum('oc,bchw->bohw', wq, concat) + bq[None, :, None, None]
    K = jnp.einsum('oc,bchw->bohw', wk, feature) + bk[None, :, None, None]
    V = jnp.einsum('oc,bchw->bohw', wv, feature) + bv[None, :, None, None]
    att = jnp.einsum('bchw,bchv->bcwv', Q, K)                                 # Q^T K per (b, c)
    att = jax.nn.softmax(att, axis=-1)
    out = jnp.einsum('bchw,bcwv->bchv', V, att)                               # V @ att
    return feature + out


if __name__ == "__main__":
    B, C, H, W = 2, 4, 16, 16

    key = jax.random.PRNGKey(0)
    k1, k3, k4, k5, k6, k7, k8 = jax.random.split(key, 7)

    feature = jax.random.normal(k1, (B, C, H, W), jnp.float32)
    flipped = jnp.flip(feature, axis=-1)  # horizontally-flipped counterpart

    # Deterministic synthetic parameters (Conv2d 1x1 kernels collapsed to matrices).
    wq = 0.1 * jax.random.normal(k3, (C, 2 * C), jnp.float32)  # query: in=2C, out=C
    bq = 0.1 * jax.random.normal(k4, (C,), jnp.float32)
    wk = 0.1 * jax.random.normal(k5, (C, C), jnp.float32)      # Key
    bk = 0.1 * jax.random.normal(k6, (C,), jnp.float32)
    wv = 0.1 * jax.random.normal(k7, (C, C), jnp.float32)      # Value
    bv = 0.1 * jax.random.normal(k8, (C,), jnp.float32)

    run = jax.jit(flip_attention)
    out = jax.block_until_ready(run(feature, flipped, wq, bq, wk, bk, wv, bv))

    ref = reference(feature, flipped, wq, bq, wk, bk, wv, bv)
    max_err = float(jnp.max(jnp.abs(out - ref)))
    # bf16 MXU operands (f32 accumulation, f32 softmax/residual) -> relaxed tol.
    assert jnp.allclose(out, ref, rtol=2e-2, atol=2e-2), f"max abs err = {max_err}"

    print("KERNEL_OK")
</pallas_src>

<mosaic_0001>
module attributes {stable_mosaic.version = 11 : i64} {
  func.func @fused_kernel(%arg0: i32, %arg1: i32, %arg2: memref<1x4x256xf32, #tpu.memory_space<vmem>>, %arg3: memref<1x4x256xf32, #tpu.memory_space<vmem>>, %arg4: memref<1x12x4xbf16, #tpu.memory_space<vmem>>, %arg5: memref<4x4xbf16, #tpu.memory_space<vmem>>, %arg6: memref<1x12x1xf32, #tpu.memory_space<vmem>>, %arg7: memref<1x4x256xf32, #tpu.memory_space<vmem>>) attributes {dimension_semantics = [#tpu.dimension_semantics<parallel>, #tpu.dimension_semantics<parallel>], iteration_bounds = array<i64: 2, 1>, scalar_prefetch = 0 : i64, scratch_operands = 0 : i64, tpu.core_type = #tpu.core_type<tc>, window_params = [{transform_indices = @transform_0, window_bounds = array<i64: 1, 4, 256>}, {transform_indices = @transform_1, window_bounds = array<i64: 1, 4, 256>}, {transform_indices = @transform_2, window_bounds = array<i64: 1, 12, 4>}, {transform_indices = @transform_3, window_bounds = array<i64: 4, 4>}, {transform_indices = @transform_4, window_bounds = array<i64: 1, 12, 1>}, {transform_indices = @transform_5, window_bounds = array<i64: 1, 4, 256>}]} {
    %c0 = arith.constant 0 : index
    %c0_0 = arith.constant 0 : index
    %c0_1 = arith.constant 0 : index
    %0 = vector.load %arg2[%c0, %c0_0, %c0_1] : memref<1x4x256xf32, #tpu.memory_space<vmem>>, vector<1x4x256xf32>
    %1 = vector.shape_cast %0 : vector<1x4x256xf32> to vector<4x256xf32>
    %2 = arith.truncf %1 : vector<4x256xf32> to vector<4x256xbf16>
    %c0_2 = arith.constant 0 : index
    %c0_3 = arith.constant 0 : index
    %c0_4 = arith.constant 0 : index
    %3 = vector.load %arg3[%c0_2, %c0_3, %c0_4] : memref<1x4x256xf32, #tpu.memory_space<vmem>>, vector<1x4x256xf32>
    %4 = vector.shape_cast %3 : vector<1x4x256xf32> to vector<4x256xf32>
    %5 = arith.truncf %4 : vector<4x256xf32> to vector<4x256xbf16>
    %c0_5 = arith.constant 0 : index
    %c0_6 = arith.constant 0 : index
    %c0_7 = arith.constant 0 : index
    %6 = vector.load %arg4[%c0_5, %c0_6, %c0_7] : memref<1x12x4xbf16, #tpu.memory_space<vmem>>, vector<1x12x4xbf16>
    %7 = vector.shape_cast %6 : vector<1x12x4xbf16> to vector<12x4xbf16>
    %cst = arith.constant dense<0.000000e+00> : vector<12x256xf32>
    %8 = tpu.matmul %7, %2, %cst {dimension_numbers = #tpu.dot_dimension_numbers<[1], [0], [0], [1], [0, 0, 1, 1], [], []>} : vector<12x4xbf16>, vector<4x256xbf16>, vector<12x256xf32> -> vector<12x256xf32>
    %c0_8 = arith.constant 0 : index
    %c0_9 = arith.constant 0 : index
    %c0_10 = arith.constant 0 : index
    %9 = vector.load %arg6[%c0_8, %c0_9, %c0_10] : memref<1x12x1xf32, #tpu.memory_space<vmem>>, vector<1x12x1xf32>
    %10 = vector.shape_cast %9 : vector<1x12x1xf32> to vector<12x1xf32>
    %11 = vector.broadcast %10 : vector<12x1xf32> to vector<12x256xf32>
    %12 = arith.addf %8, %11 : vector<12x256xf32>
    %13 = vector.extract_strided_slice %12 {offsets = [0, 0], sizes = [4, 256], strides = [1, 1]} : vector<12x256xf32> to vector<4x256xf32>
    %c0_11 = arith.constant 0 : index
    %c0_12 = arith.constant 0 : index
    %14 = vector.load %arg5[%c0_11, %c0_12] : memref<4x4xbf16, #tpu.memory_space<vmem>>, vector<4x4xbf16>
    %cst_13 = arith.constant dense<0.000000e+00> : vector<4x256xf32>
    %15 = tpu.matmul %14, %5, %cst_13 {dimension_numbers = #tpu.dot_dimension_numbers<[1], [0], [0], [1], [0, 0, 1, 1], [], []>} : vector<4x4xbf16>, vector<4x256xbf16>, vector<4x256xf32> -> vector<4x256xf32>
    %16 = arith.addf %13, %15 : vector<4x256xf32>
    %17 = vector.extract_strided_slice %12 {offsets = [4, 0], sizes = [4, 256], strides = [1, 1]} : vector<12x256xf32> to vector<4x256xf32>
    %18 = vector.extract_strided_slice %12 {offsets = [8, 0], sizes = [4, 256], strides = [1, 1]} : vector<12x256xf32> to vector<4x256xf32>
    %19 = arith.truncf %16 : vector<4x256xf32> to vector<4x256xbf16>
    %20 = vector.shape_cast %19 : vector<4x256xbf16> to vector<4x16x16xbf16>
    %21 = arith.truncf %17 : vector<4x256xf32> to vector<4x256xbf16>
    %22 = vector.shape_cast %21 : vector<4x256xbf16> to vector<4x16x16xbf16>
    %23 = arith.truncf %18 : vector<4x256xf32> to vector<4x256xbf16>
    %24 = vector.shape_cast %23 : vector<4x256xbf16> to vector<4x16x16xbf16>
    "tpu.trace_start"() <{level = 10 : i32, message = "chw,chv->cwv"}> : () -> ()
    %cst_14 = arith.constant dense<0.000000e+00> : vector<4x16x16xf32>
    %25 = tpu.matmul %20, %22, %cst_14 {dimension_numbers = #tpu.dot_dimension_numbers<[1], [1], [2], [2], [0, 0, 0, 2, 1, 2], [0], [0]>} : vector<4x16x16xbf16>, vector<4x16x16xbf16>, vector<4x16x16xf32> -> vector<4x16x16xf32>
    "tpu.trace_stop"() : () -> ()
    %cst_15 = arith.constant dense<0xFF800000> : vector<4x16xf32>
    %26 = vector.multi_reduction <maximumf>, %25, %cst_15 [2] : vector<4x16x16xf32> to vector<4x16xf32>
    %27 = vector.shape_cast %26 : vector<4x16xf32> to vector<4x16x1xf32>
    %28 = vector.broadcast %27 : vector<4x16x1xf32> to vector<4x16x16xf32>
    %29 = arith.subf %25, %28 : vector<4x16x16xf32>
    %30 = math.exp %29 : vector<4x16x16xf32>
    %cst_16 = arith.constant dense<0.000000e+00> : vector<4x16xf32>
    %31 = vector.multi_reduction <add>, %30, %cst_16 [2] : vector<4x16x16xf32> to vector<4x16xf32>
    %32 = vector.shape_cast %31 : vector<4x16xf32> to vector<4x16x1xf32>
    %33 = tpu.reciprocal %32 {approx = true} : vector<4x16x1xf32> -> vector<4x16x1xf32>
    %34 = vector.broadcast %33 : vector<4x16x1xf32> to vector<4x16x16xf32>
    %35 = arith.mulf %30, %34 : vector<4x16x16xf32>
    %36 = arith.truncf %35 : vector<4x16x16xf32> to vector<4x16x16xbf16>
    "tpu.trace_start"() <{level = 10 : i32, message = "chw,cwv->chv"}> : () -> ()
    %cst_17 = arith.constant dense<0.000000e+00> : vector<4x16x16xf32>
    %37 = tpu.matmul %24, %36, %cst_17 {dimension_numbers = #tpu.dot_dimension_numbers<[2], [1], [1], [2], [0, 0, 0, 1, 1, 2], [0], [0]>} : vector<4x16x16xbf16>, vector<4x16x16xbf16>, vector<4x16x16xf32> -> vector<4x16x16xf32>
    "tpu.trace_stop"() : () -> ()
    %c4_i32 = arith.constant 4 : i32
    %38 = arith.muli %arg1, %c4_i32 : i32
    %39 = tpu.assume_multiple %38, 4 : i32
    %c0_i32 = arith.constant 0 : i32
    %c0_i32_18 = arith.constant 0 : i32
    %c0_i32_19 = arith.constant 0 : i32
    %40 = tpu.memref_slice %arg2[%c0_i32, %c0_i32_18, %c0_i32_19] : memref<1x4x256xf32, #tpu.memory_space<vmem>> -> memref<1x4x256xf32, #tpu.memory_space<vmem>>
    %41 = tpu.memref_squeeze %40 : memref<1x4x256xf32, #tpu.memory_space<vmem>> -> memref<4x256xf32, #tpu.memory_space<vmem>>
    %42 = arith.index_cast %39 : i32 to index
    %c0_20 = arith.constant 0 : index
    %43 = vector.load %41[%42, %c0_20] : memref<4x256xf32, #tpu.memory_space<vmem>>, vector<4x256xf32>
    %44 = vector.shape_cast %37 : vector<4x16x16xf32> to vector<4x256xf32>
    %45 = arith.addf %43, %44 : vector<4x256xf32>
    %c0_21 = arith.constant 0 : index
    %c0_22 = arith.constant 0 : index
    %c0_23 = arith.constant 0 : index
    %46 = vector.load %arg7[%c0_21, %c0_22, %c0_23] : memref<1x4x256xf32, #tpu.memory_space<vmem>>, vector<1x4x256xf32>
    %47 = vector.shape_cast %46 : vector<1x4x256xf32> to vector<4x256xf32>
    %48 = vector.shape_cast %45 : vector<4x256xf32> to vector<1x4x256xf32>
    tpu.vector_store %arg7[%c0_21, %c0_22, %c0_23], %48 {strides = array<i32>} : memref<1x4x256xf32, #tpu.memory_space<vmem>>, vector<1x4x256xf32>,
    return
  }
  func.func @transform_0(%arg0: i32, %arg1: i32) -> (i32, i32, i32) {
    %c0_i32 = arith.constant 0 : i32
    %c0_i32_0 = arith.constant 0 : i32
    %c0_i32_1 = arith.constant 0 : i32
    return %arg0, %c0_i32, %c0_i32_0 : i32, i32, i32
  }
  func.func @transform_1(%arg0: i32, %arg1: i32) -> (i32, i32, i32) {
    %c0_i32 = arith.constant 0 : i32
    %c0_i32_0 = arith.constant 0 : i32
    %c0_i32_1 = arith.constant 0 : i32
    return %arg0, %c0_i32, %c0_i32_0 : i32, i32, i32
  }
  func.func @transform_2(%arg0: i32, %arg1: i32) -> (i32, i32, i32) {
    %c0_i32 = arith.constant 0 : i32
    %c0_i32_0 = arith.constant 0 : i32
    %c0_i32_1 = arith.constant 0 : i32
    return %arg1, %c0_i32, %c0_i32_0 : i32, i32, i32
  }
  func.func @transform_3(%arg0: i32, %arg1: i32) -> (i32, i32) {
    %c0_i32 = arith.constant 0 : i32
    %c0_i32_0 = arith.constant 0 : i32
    return %arg1, %c0_i32 : i32, i32
  }
  func.func @transform_4(%arg0: i32, %arg1: i32) -> (i32, i32, i32) {
    %c0_i32 = arith.constant 0 : i32
    %c0_i32_0 = arith.constant 0 : i32
    %c0_i32_1 = arith.constant 0 : i32
    return %arg1, %c0_i32, %c0_i32_0 : i32, i32, i32
  }
  func.func @transform_5(%arg0: i32, %arg1: i32) -> (i32, i32, i32) {
    %c0_i32 = arith.constant 0 : i32
    %c0_i32_0 = arith.constant 0 : i32
    return %arg0, %arg1, %c0_i32 : i32, i32, i32
  }
}

</mosaic_0001>

<bundles_post_ra>
// kernel: flip_attention.1
= control target key start
LH: loop header
LB: loop body
LE: loop exit
PB: predicated region body
PF: predicated region fallthrough
CT: control target
= control target key end

     0   :  { %s2075_s18 = smov 0   ;;  %s2077_s19 = smov 0   ;;  %s2441_s0 = inlined_call_operand.vmem [shape: f32[2,4,256], index: 0, kind: input, shape index: {}]   ;;  %s2442_s1 = inlined_call_operand.vmem [shape: f32[2,4,256], index: 1, kind: input, shape index: {}]   ;;  %s2443_s2 = inlined_call_operand.vmem [shape: bf16[1,12,4], index: 2, kind: input, shape index: {}]   ;;  %s2444_s3 = inlined_call_operand.vmem [shape: bf16[4,4], index: 3, kind: input, shape index: {}]   ;;  %s2445_s4 = inlined_call_operand.vmem [shape: f32[1,12,1], index: 4, kind: input, shape index: {}]   ;;  %s2446_s5 = inlined_call_operand.vmem [shape: f32[2,4,256], index: 5, kind: output, shape index: {}]  }
   0x1   :  { %s2079_s20 = smov 0  }
   0x2 LB: > { %s27_s21 = sadd.s32 1, %s2027_s19  ;;  %p1847_p0 = scmp.ge.s32.totalorder %s2031_s20, 1  ;;  %s2031_s20 = sphi %s2079_s20, %s15_s20   ;;  %s2027_s19 = sphi %s2077_s19, %s2448_s19   ;;  %s2023_s18 = sphi %s2075_s18, %s2447_s18  }
   0x3   : > { %p29_p1 = scmp.ge.s32.totalorder %s27_s21, 2  ;;  %p240_p2 = scmp.lt.s32.totalorder %s2031_s20, 3 }
   0x5   : > { %s2450_s21 = smov (%p29_p1, %s27_s21), 0  ;;  %p241_p3 = pnand %p1847_p0, %p240_p2 }
   0x6   : > { %p291_p4 = scmp.lt.s32.totalorder (!%p241_p3), %s2023_s18, 1  ;;  %v2033_v0 = vmov (!%p241_p3), 0   ;;  %v339_v1 = vld [vmem:[%s2445_s4] sm:$0xff] (!%p241_p3)  ;;  %vm360_vm0 = vcmask (!%p241_p3), 1041408   ;;  %vm356_vm1 = vcmask (!%p241_p3), 31744   ;;  %s2034_s10 = smov (!%p241_p3), 96   ;;  %v513_v40 = vlaneseq (!%p241_p3) }
   0x7   : > { %244 = sbr.rel (%p241_p3) target bundleno = 1638 (0x666), region = 40  ;;  %399 = vmatprep.mubr.bf16.mxu0 (!%p241_p3), %v2033_v0  ;;  %452 = vmatprep.mubr.bf16.mxu1 (!%p241_p3), %v2033_v0  ;;  %v1975_v12 = vld [vmem:[%s2443_s2] sm:$0x3f] (!%p241_p3)   ;;  %s2035_s11 = smov (!%p241_p3), 112   ;;  %v2041_v31 = vmov (!%p241_p3), 0.0   ;;  %vm2042_vm2 = vmmov (!%p241_p3), 0  }
   0x8   : > { %1972 = vset.pattern.permute.xlu0 (!%p241_p3), %v2033_v0  ;;  %v410_v13 = vld [vmem:[%s2444_s3] sm:$0x3] (!%p241_p3)  ;;  %s2036_s12 = smov (!%p241_p3), 80   ;;  %s2037_s13 = smov (!%p241_p3), 64   ;;  %v2043_v38 = vmov (!%p241_p3), 1983009808  }
   0x9   : > { %343 = vperm.xlu0 (!%p241_p3), %1972, %v339_v1   ;;  %s2038_s14 = smov (!%p241_p3), 48   ;;  %s2039_s15 = smov (!%p241_p3), 32   ;;  %v511_v39 = vunpack.c.l.s4 (!%p241_p3), %v2043_v38  ;;  %v514_v44 = vshrl.u32 (!%p241_p3), %v513_v40, 7  ;;  %v2044_v49 = vmov (!%p241_p3), 1934713408   ;;  %vm979_vm3 = vcmask (!%p241_p3), 130048  }
   0xa   : > { %s2040_s16 = smov (!%p241_p3), 16   ;;  %v543_v50 = vunpack.c.l.s4 (!%p241_p3), %v2044_v49  ;;  %vm1672_vm4 = vcmask (!%p241_p3), 261120   ;;  %vm1674_vm5 = vcmask (!%p241_p3), 392192   ;;  %vm1676_vm6 = vcmask (!%p241_p3), 523264  }
   0xb   : > { %v512_v43 = vunpack.c.0.s8 (!%p241_p3), %v511_v39  ;;  %vm1678_vm7 = vcmask (!%p241_p3), 654336   ;;  %vm1680_vm8 = vcmask (!%p241_p3), 785408   ;;  %vm1682_vm9 = vcmask (!%p241_p3), 916480  }
   0xc   : > { %v544_v58 = vunpack.c.0.s8 (!%p241_p3), %v543_v50 }
   0xd   : > { %v2189_v51 = vsub.s32 (!%p241_p3), %v512_v43, %v514_v44 }
   0xe   : > { %s2452_s18 = smov (!%p291_p4, %s2023_s18), 1 }
   0xf   : > { %s2096_s24 = sshll.u32 %s2452_s18, 3 }
  0x10   : > { %s2102_s27 = scalar_lea.vmem %s2441_s0, %s2096_s24  ;;  %s300_s30 = scalar_lea.vmem %s2442_s1, %s2096_s24 }
  0x11   : > { %v325_v2 = vld [vmem:[%s2102_s27] sm:$0xff]  ;;  %s323_s25 = scalar_lea.vmem %s2446_s5, %s2096_s24 }
  0x12   : > { %v331_v3 = vld [vmem:[%s300_s30] sm:$0xff]  ;;  %v327_v4 = vcombine.high %v325_v2, %v325_v2  ;;  %v329_v6 = vpack.c.bf16 %v325_v2, %v325_v2 }
  0x13   : > { %v333_v5 = vcombine.high %v331_v3, %v331_v3  ;;  %v335_v7 = vpack.c.bf16 %v331_v3, %v331_v3 }
  0x14   : > { %v330_v8 = vpack.c.bf16 %v327_v4, %v327_v4  ;;  %v362_v10 = vsel %vm360_vm0, %v329_v6, 0 }
  0x15   : > { %v336_v9 = vpack.c.bf16 %v333_v5, %v333_v5  ;;  %v415_v11 = vsel %vm360_vm0, %v335_v7, 0  ;;  %v2197_v5 = vsub.s32 %v544_v58, %v514_v44 }
  0x16   : > { %1855 = vmatprep.subr.msk.bf16.mxu0 %vm360_vm0, %v330_v8 }
  0x17   : > { %1857 = vmatprep.subr.msk.bf16.mxu1 %vm360_vm0, %v336_v9  ;;  %368 = vmatpush1.bf16.msra.mxu0 %v362_v10 }
  0x18   : > { %421 = vmatpush1.bf16.msra.mxu1 %v415_v11  ;;  %1888 = vmatprep.subr.bf16.mxu0 %v2041_v31 }
  0x19   : > { %1894 = vmatprep.subr.bf16.mxu1 %v2041_v31 }
  0x1a   : > { %1856 = vmatmul.mubr.msk.bf16.vlgmr.msra.gmra.mrb[0].mxu0 %vm356_vm1, %v1975_v12 }
  0x1b   : > { %1858 = vmatmul.mubr.msk.bf16.vlgmr.msra.gmra.mrb[0].mxu1 %vm356_vm1, %v410_v13  ;;  %1890 = vmatprep.mubr.msk.bf16.mxu0 %vm2042_vm2, %v2041_v31 }
  0x1c   : > { %1896 = vmatprep.mubr.msk.bf16.mxu1 %vm2042_vm2, %v2041_v31 }
  0x88   : > { %v344_v14 = vpop.permute.xlu0 %343 }
  0xed   : > { %v401_v15 = vpop.f32.mrb[0].mxu0 }
  0xee   : > { %v454_v16 = vpop.f32.mrb[0].mxu1  ;;  %v402_v17 = vadd.f32 %v401_v15, %v344_v14  ;;  %v403_v18 = vpop.f32.mrb[1].mxu0 }
  0xef   : > { %v456_v19 = vpop.f32.mrb[1].mxu1  ;;  %v404_v20 = vadd.f32 %v403_v18, %v344_v14  ;;  %v2115_v21 = vpop.f32.mrb[2].mxu0 }
  0xf0   : > { %v458_v22 = vpop.f32.mrb[2].mxu1  ;;  %v461_v23 = vadd.f32 %v454_v16, %v402_v17  ;;  %v2117_v24 = vpop.f32.mrb[3].mxu0  ;;  %v2151_v29 = vpack.c.bf16 %v402_v17, %v402_v17 }
  0xf1   : > { %v459_v25 = vpop.f32.mrb[3].mxu1  ;;  %v462_v26 = vadd.f32 %v456_v19, %v404_v20  ;;  %v2165_v30 = vpack.c.bf16 %v404_v20, %v404_v20 }
  0xf2   : > { %v2119_v27 = vpack.c.bf16 %v461_v23, %v461_v23  ;;  %v657_v50 = vrot.slane %v2151_v29, 2 }
  0xf3   : > { %v2133_v28 = vpack.c.bf16 %v462_v26, %v462_v26 }
  0xf4   : > { %469 = vrot.lane.b32.xlu1 %v2119_v27, %s2034_s10  ;;  %466 = vrot.lane.b32.xlu0 %v2119_v27, %s2035_s11 }
  0xf8   : > { %472 = vrot.lane.b32.xlu1 %v2119_v27, %s2036_s12  ;;  %475 = vrot.lane.b32.xlu0 %v2119_v27, %s2037_s13 }
  0xfc   : > { %478 = vrot.lane.b32.xlu1 %v2119_v27, %s2038_s14  ;;  %481 = vrot.lane.b32.xlu0 %v2119_v27, %s2039_s15 }
 0x100   : > { %484 = vrot.lane.b32.xlu1 %v2119_v27, %s2040_s16  ;;  %488 = vrot.lane.b32.xlu0 %v2133_v28, %s2035_s11 }
 0x104   : > { %491 = vrot.lane.b32.xlu1 %v2133_v28, %s2034_s10  ;;  %494 = vrot.lane.b32.xlu0 %v2133_v28, %s2036_s12 }
 0x108   : > { %497 = vrot.lane.b32.xlu1 %v2133_v28, %s2037_s13  ;;  %500 = vrot.lane.b32.xlu0 %v2133_v28, %s2038_s14 }
 0x10c   : > { %503 = vrot.lane.b32.xlu1 %v2133_v28, %s2039_s15  ;;  %506 = vrot.lane.b32.xlu0 %v2133_v28, %s2040_s16 }
 0x110   : > { %628 = vrot.lane.b32.xlu1 %v2151_v29, %s2035_s11  ;;  %630 = vrot.lane.b32.xlu0 %v2151_v29, %s2034_s10 }
 0x114   : > { %632 = vrot.lane.b32.xlu1 %v2151_v29, %s2036_s12  ;;  %634 = vrot.lane.b32.xlu0 %v2151_v29, %s2037_s13 }
 0x118   : > { %636 = vrot.lane.b32.xlu1 %v2151_v29, %s2038_s14  ;;  %638 = vrot.lane.b32.xlu0 %v2151_v29, %s2039_s15 }
 0x11c   : > { %640 = vrot.lane.b32.xlu1 %v2151_v29, %s2040_s16  ;;  %643 = vrot.lane.b32.xlu0 %v2165_v30, %s2035_s11 }
 0x120   : > { %645 = vrot.lane.b32.xlu1 %v2165_v30, %s2034_s10  ;;  %647 = vrot.lane.b32.xlu0 %v2165_v30, %s2036_s12 }
 0x124   : > { %649 = vrot.lane.b32.xlu1 %v2165_v30, %s2037_s13  ;;  %651 = vrot.lane.b32.xlu0 %v2165_v30, %s2038_s14 }
 0x128   : > { %653 = vrot.lane.b32.xlu1 %v2165_v30, %s2039_s15  ;;  %655 = vrot.lane.b32.xlu0 %v2165_v30, %s2040_s16 }
 0x166   : > { %v470_v32 = vpop.permute.xlu1 %469  ;;  %v467_v33 = vpop.permute.xlu0 %466 }
 0x16a   : > { %v473_v34 = vpop.permute.xlu1 %472  ;;  %v476_v35 = vpop.permute.xlu0 %475 }
 0x16b   : > { %v509_v52 = vcombine.low %v2119_v27, %v476_v35 }
 0x16d   : > { %v516_v61 = vrot.slane %v509_v52, %v2189_v51 }
 0x16e   : > { %v479_v36 = vpop.permute.xlu1 %478  ;;  %v482_v37 = vpop.permute.xlu0 %481 }
 0x16f   : > { %v517_v47 = vcombine.low %v470_v32, %v482_v37  ;;  %v559_v53 = vcombine.low %v467_v33, %v479_v36 }
 0x171   : > { %v524_v56 = vrot.slane %v517_v47, %v2189_v51  ;;  %v566_v62 = vrot.slane %v559_v53, %v2189_v51 }
 0x172   : > { %v485_v41 = vpop.permute.xlu1 %484  ;;  %v489_v42 = vpop.permute.xlu0 %488 }
 0x173   : > { %v567_v48 = vcombine.low %v473_v34, %v485_v41  ;;  %v541_v3 = vcombine.low %v516_v61, %v524_v56  ;;  %v665_v61 = vrot.slane %v2165_v30, 2 }
 0x175   : > { %v574_v57 = vrot.slane %v567_v48, %v2189_v51  ;;  %v548_v14 = vrot.slane %v541_v3, %v2197_v5 }
 0x176   : > { %v492_v45 = vpop.permute.xlu1 %491  ;;  %v495_v46 = vpop.permute.xlu0 %494 }
 0x177   : > { %v591_v4 = vcombine.low %v566_v62, %v574_v57 }
 0x179   : > { %v598_v16 = vrot.slane %v591_v4, %v2197_v5 }
 0x17a   : > { %v498_v54 = vpop.permute.xlu1 %497  ;;  %v501_v55 = vpop.permute.xlu0 %500 }
 0x17b   : > { %v525_v59 = vcombine.low %v2133_v28, %v498_v54  ;;  %v575_v60 = vcombine.low %v489_v42, %v501_v55 }
 0x17d   : > { %v532_v6 = vrot.slane %v525_v59, %v2189_v51  ;;  %v582_v7 = vrot.slane %v575_v60, %v2189_v51 }
 0x17e   : > { %v504_v63 = vpop.permute.xlu1 %503  ;;  %v507_v0 = vpop.permute.xlu0 %506 }
 0x17f   : > { %v533_v1 = vcombine.low %v492_v45, %v504_v63  ;;  %v583_v2 = vcombine.low %v495_v46, %v507_v0 }
 0x181   : > { %v540_v8 = vrot.slane %v533_v1, %v2189_v51  ;;  %v590_v9 = vrot.slane %v583_v2, %v2189_v51 }
 0x182   : > { %v629_v10 = vpop.permute.xlu1 %628  ;;  %v631_v11 = vpop.permute.xlu0 %630 }
 0x183   : > { %v549_v12 = vcombine.low %v532_v6, %v540_v8  ;;  %v599_v13 = vcombine.low %v582_v7, %v590_v9  ;;  %v659_v45 = vrot.slane %v631_v11, 2  ;;  %v658_v49 = vrot.slane %v629_v10, 2 }
 0x185   : > { %v556_v15 = vrot.slane %v549_v12, %v2197_v5  ;;  %v606_v17 = vrot.slane %v599_v13, %v2197_v5 }
 0x186   : > { %v633_v18 = vpop.permute.xlu1 %632  ;;  %v635_v19 = vpop.permute.xlu0 %634 }
 0x187   : > { %v557_v20 = vcombine.low %v548_v14, %v556_v15  ;;  %v607_v22 = vcombine.low %v598_v16, %v606_v17  ;;  %v558_v23 = vcombine.high %v548_v14, %v556_v15  ;;  %v608_v25 = vcombine.high %v598_v16, %v606_v17 }
 0x188   : > { %v660_v46 = vrot.slane %v633_v18, 2  ;;  %v661_v47 = vrot.slane %v635_v19, 2 }
 0x189   : > { %v611_v26 = vpack.i.b16 %v607_v22, %v557_v20  ;;  %v613_v27 = vshrl.u32 %v557_v20, 16  ;;  %v614_v28 = vshrl.u32 %v607_v22, 16  ;;  %v621_v34 = vshrl.u32 %v558_v23, 16 }
 0x18a   : > { %v637_v32 = vpop.permute.xlu1 %636  ;;  %v639_v33 = vpop.permute.xlu0 %638  ;;  %v622_v35 = vshrl.u32 %v608_v25, 16  ;;  %v619_v40 = vpack.i.b16 %v608_v25, %v558_v23  ;;  %v689_v58 = vcombine.low %v657_v50, %v661_v47 }
 0x18b   : > { %963 = vxpose.xlu1.c.b16.start.end [1/1] (short) (narrow) %v611_v26, 16  ;;  %v615_v36 = vpack.i.b16 %v614_v28, %v613_v27  ;;  %v663_v41 = vrot.slane %v639_v33, 2  ;;  %v662_v48 = vrot.slane %v637_v32, 2 }
 0x18c   : > { %v623_v37 = vpack.i.b16 %v622_v35, %v621_v34  ;;  %v696_v8 = vrot.slane %v689_v58, %v2189_v51 }
 0x18d   : > { %1024 = vxpose.xlu0.c.b16.start.end [1/1] (short) (narrow) %v615_v36, 16  ;;  %v697_v52 = vcombine.low %v659_v45, %v663_v41  ;;  %v739_v59 = vcombine.low %v658_v49, %v662_v48 }
 0x18e   : > { %v641_v38 = vpop.permute.xlu1 %640  ;;  %v644_v39 = vpop.permute.xlu0 %643 }
 0x18f   : > { %1144 = vxpose.xlu1.c.b16.start.end [1/1] (short) (narrow) %v623_v37, 16  ;;  %v664_v42 = vrot.slane %v641_v38, 2  ;;  %v666_v60 = vrot.slane %v644_v39, 2  ;;  %v704_v62 = vrot.slane %v697_v52, %v2189_v51  ;;  %v746_v9 = vrot.slane %v739_v59, %v2189_v51 }
 0x191   : > { %1084 = vxpose.xlu0.c.b16.start.end [1/1] (short) (narrow) %v619_v40, 16  ;;  %v747_v53 = vcombine.low %v660_v46, %v664_v42  ;;  %v721_v12 = vcombine.low %v696_v8, %v704_v62 }
 0x192   : > { %v646_v43 = vpop.permute.xlu1 %645  ;;  %v648_v44 = vpop.permute.xlu0 %647 }
 0x193   : > { %v754_v63 = vrot.slane %v747_v53, %v2189_v51  ;;  %v667_v0 = vrot.slane %v646_v43, 2  ;;  %v668_v1 = vrot.slane %v648_v44, 2  ;;  %v728_v19 = vrot.slane %v721_v12, %v2197_v5 }
 0x195   : > { %v771_v30 = vcombine.low %v746_v9, %v754_v63 }
 0x196   : > { %v650_v54 = vpop.permute.xlu1 %649  ;;  %v652_v55 = vpop.permute.xlu0 %651 }
 0x197   : > { %v669_v56 = vrot.slane %v650_v54, 2  ;;  %v670_v57 = vrot.slane %v652_v55, 2  ;;  %v778_v20 = vrot.slane %v771_v30, %v2197_v5 }
 0x199   : > { %v705_v29 = vcombine.low %v665_v61, %v669_v56  ;;  %v755_v4 = vcombine.low %v666_v60, %v670_v57 }
 0x19a   : > { %v654_v2 = vpop.permute.xlu1 %653  ;;  %v656_v3 = vpop.permute.xlu0 %655 }
 0x19b   : > { %v671_v6 = vrot.slane %v654_v2, 2  ;;  %v672_v7 = vrot.slane %v656_v3, 2  ;;  %v712_v13 = vrot.slane %v705_v29, %v2189_v51  ;;  %v762_v14 = vrot.slane %v755_v4, %v2189_v51  ;;  %v340_v29 = vld [vmem:[%s2445_s4 + $0x8] sm:$0xf] }
 0x19d   : > { %v713_v10 = vcombine.low %v667_v0, %v671_v6  ;;  %v763_v11 = vcombine.low %v668_v1, %v672_v7 }
 0x19f   : > { %v720_v15 = vrot.slane %v713_v10, %v2189_v51  ;;  %v770_v16 = vrot.slane %v763_v11, %v2189_v51 }
 0x1a1   : > { %v729_v17 = vcombine.low %v712_v13, %v720_v15  ;;  %v779_v18 = vcombine.low %v762_v14, %v770_v16 }
 0x1a3   : > { %v736_v22 = vrot.slane %v729_v17, %v2197_v5  ;;  %v786_v23 = vrot.slane %v779_v18, %v2197_v5 }
 0x1a5   : > { %v737_v25 = vcombine.low %v728_v19, %v736_v22  ;;  %v787_v26 = vcombine.low %v778_v20, %v786_v23  ;;  %v738_v27 = vcombine.high %v728_v19, %v736_v22  ;;  %v788_v28 = vcombine.high %v778_v20, %v786_v23 }
 0x1a7   : > { %v791_v32 = vpack.i.b16 %v787_v26, %v737_v25  ;;  %v793_v33 = vshrl.u32 %v737_v25, 16  ;;  %v794_v34 = vshrl.u32 %v787_v26, 16  ;;  %v799_v35 = vpack.i.b16 %v788_v28, %v738_v27 }
 0x1a8   : > { %v801_v36 = vshrl.u32 %v738_v27, 16  ;;  %v802_v37 = vshrl.u32 %v788_v28, 16 }
 0x1a9   : > { %1889 = vmatpush3.bf16.msra.mxu0 %v791_v32  ;;  %v795_v38 = vpack.i.b16 %v794_v34, %v793_v33 }
 0x1aa   : > { %1900 = vmatprep.subr.bf16.mxu0 %v2041_v31  ;;  %v803_v39 = vpack.i.b16 %v802_v37, %v801_v36 }
 0x1ab   : > { %1895 = vmatpush3.bf16.msra.mxu1 %v795_v38 }
 0x1ac   : > { %1906 = vmatprep.subr.bf16.mxu1 %v2041_v31 }
 0x1f1   : > { %v971_v40 = vpop.trf.xlu1 }
 0x1f2   : > { %1891 = vmatmul.mubr.msk.bf16.vlgmr.msra.gmra.mrb[4].mxu0 %vm979_vm3, %v971_v40 }
 0x1f3   : > { %1901 = vmatpush3.bf16.msra.mxu0 %v799_v35  ;;  %v1032_v41 = vpop.trf.xlu0  ;;  %1902 = vmatprep.mubr.msk.bf16.mxu0 %vm2042_vm2, %v2041_v31 }
 0x1f4   : > { %1897 = vmatmul.mubr.msk.bf16.vlgmr.msra.gmra.mrb[4].mxu1 %vm979_vm3, %v1032_v41  ;;  %1912 = vmatprep.subr.bf16.mxu0 %v2041_v31 }
 0x1f5   : > { %1907 = vmatpush3.bf16.msra.mxu1 %v803_v39  ;;  %1908 = vmatprep.mubr.msk.bf16.mxu1 %vm2042_vm2, %v2041_v31  ;;  %v1152_v43 = vpop.trf.xlu1 }
 0x1f6   : > { %1918 = vmatprep.subr.bf16.mxu1 %v2041_v31 }
 0x1f7   : > { %v1092_v42 = vpop.trf.xlu0 }
 0x1fa   : > { %1903 = vmatmul.mubr.msk.bf16.vlgmr.msra.gmra.mrb[8].mxu0 %vm979_vm3, %v1092_v42 }
 0x1fb   : > { %1914 = vmatprep.mubr.msk.bf16.mxu0 %vm2042_vm2, %v2041_v31 }
 0x1fc   : > { %1909 = vmatmul.mubr.msk.bf16.vlgmr.msra.gmra.mrb[8].mxu1 %vm979_vm3, %v1152_v43 }
 0x1fd   : > { %1920 = vmatprep.mubr.msk.bf16.mxu1 %vm2042_vm2, %v2041_v31 }
 0x2c5   : > { %v2237_v44 = vpop.f32.mrb[4].mxu0 }
 0x2c6   : > { %v1892_v45 = vpop.f32.mrb[5].mxu0  ;;  %v1204_v46 = vsel %vm979_vm3, %v2237_v44, -inf }
 0x2c7   : > { %1205 = vmax.xlane.f32.xlu0 %v1204_v46  ;;  %v2241_v47 = vpop.f32.mrb[6].mxu0  ;;  %v2243_v48 = vpop.f32.mrb[4].mxu1 }
 0x2c8   : > { %v1893_v49 = vpop.f32.mrb[7].mxu0  ;;  %v1898_v50 = vpop.f32.mrb[5].mxu1  ;;  %v1207_v52 = vsel %vm979_vm3, %v2241_v47, -inf  ;;  %v1210_v53 = vsel %vm979_vm3, %v2243_v48, -inf }
 0x2c9   : > { %1208 = vmax.xlane.f32.xlu1 %v1207_v52  ;;  %v2249_v54 = vpop.f32.mrb[6].mxu1 }
 0x2ca   : > { %v1899_v55 = vpop.f32.mrb[7].mxu1  ;;  %v1213_v56 = vsel %vm979_vm3, %v2249_v54, -inf }
 0x2cb   : > { %1211 = vmax.xlane.f32.xlu0 %v1210_v53 }
 0x2cd   : > { %1214 = vmax.xlane.f32.xlu1 %v1213_v56  ;;  %v2253_v57 = vpop.f32.mrb[8].mxu0 }
 0x2ce   : > { %v1904_v58 = vpop.f32.mrb[9].mxu0  ;;  %v1216_v59 = vsel %vm979_vm3, %v2253_v57, -inf }
 0x2cf   : > { %v1197_v60 = vpop.f32.mrb[8].mxu1  ;;  %1217 = vmax.xlane.f32.xlu0 %v1216_v59  ;;  %v2257_v61 = vpop.f32.mrb[10].mxu0 }
 0x2d0   : > { %v1905_v62 = vpop.f32.mrb[11].mxu0  ;;  %v1910_v63 = vpop.f32.mrb[9].mxu1  ;;  %v1219_v0 = vsel %vm979_vm3, %v2257_v61, -inf  ;;  %v1222_v1 = vsel %vm979_vm3, %v1197_v60, -inf }
 0x2d1   : > { %v2262_v2 = vpop.f32.mrb[10].mxu1  ;;  %1220 = vmax.xlane.f32.xlu1 %v1219_v0 }
 0x2d2   : > { %v1911_v3 = vpop.f32.mrb[11].mxu1  ;;  %v1225_v18 = vsel %vm979_vm3, %v2262_v2, -inf }
 0x2d3   : > { %1223 = vmax.xlane.f32.xlu0 %v1222_v1 }
 0x2e9   : > { %348 = vperm.xlu0 %1972, %v340_v29  }
 0x354   : > { %v1206_v4 = vpop.xlane.xlu0 %1205 }
 0x355   : > { %v1228_v6 = vsub.f32 %v2237_v44, %v1206_v4 }
 0x356   : > { %v1209_v19 = vpop.xlane.xlu1 %1208 }
 0x357   : > { %v1236_v20 = vmul.f32 1.442695, %v1228_v6  ;;  %v1229_v22 = vsub.f32 %v2241_v47, %v1209_v19 }
 0x358   : > { %v1212_v7 = vpop.xlane.xlu0 %1211 }
 0x359   : > { %v1230_v8 = vsub.f32 %v2243_v48, %v1212_v7  ;;  %v1238_v25 = vmul.f32 1.442695, %v1229_v22 }
 0x35a   : > { %v1215_v23 = vpop.xlane.xlu1 %1214 }
 0x35b   : > { %v1240_v27 = vmul.f32 1.442695, %v1230_v8  ;;  %v1231_v28 = vsub.f32 %v2249_v54, %v1215_v23 }
 0x35c   : > { %v1218_v9 = vpop.xlane.xlu0 %1217 }
 0x35d   : > { %v1232_v10 = vsub.f32 %v2253_v57, %v1218_v9  ;;  %v1242_v33 = vmul.f32 1.442695, %v1231_v28 }
 0x35e   : > { %v1221_v26 = vpop.xlane.xlu1 %1220 }
 0x35f   : > { %v1244_v36 = vmul.f32 1.442695, %v1232_v10  ;;  %v1233_v37 = vsub.f32 %v2257_v61, %v1221_v26 }
 0x360   : > { %v1224_v11 = vpop.xlane.xlu0 %1223 }
 0x361   : > { %v1246_v41 = vmul.f32 1.442695, %v1233_v37 }
 0x368   : > { %v349_v12 = vpop.permute.xlu0 %348 }
 0x369   : > { %v406_v30 = vadd.f32 %v2115_v21, %v349_v12  ;;  %v408_v13 = vadd.f32 %v2117_v24, %v349_v12  ;;  %v1234_v21 = vsub.f32 %v1197_v60, %v1224_v11 }
 0x36b   : > { %v2272_v14 = vpack.c.bf16 %v406_v30, %v406_v30  ;;  %v2278_v15 = vpack.c.bf16 %v408_v13, %v408_v13  ;;  %v1248_v24 = vmul.f32 1.442695, %v1234_v21 }
 0x36d   : > { %817 = vrot.lane.b32.xlu0 %v2272_v14, %s2037_s13  ;;  %808 = vrot.lane.b32.xlu1 %v2272_v14, %s2035_s11  ;;  %1976 = vpow2.f32 %v1248_v24 }
 0x36e   : > { %1978 = vpow2.f32 %v1236_v20 }
 0x36f   : > { %1980 = vpow2.f32 %v1238_v25 }
 0x370   : > { %1982 = vpow2.f32 %v1240_v27 }
 0x371   : > { %839 = vrot.lane.b32.xlu0 %v2278_v15, %s2037_s13  ;;  %811 = vrot.lane.b32.xlu1 %v2272_v14, %s2034_s10  ;;  %1984 = vpow2.f32 %v1242_v33 }
 0x372   : > { %1986 = vpow2.f32 %v1244_v36 }
 0x373   : > { %1988 = vpow2.f32 %v1246_v41 }
 0x375   : > { %814 = vrot.lane.b32.xlu1 %v2272_v14, %s2036_s12 }
 0x377   : > { %v2296_v16 = vpop.eup %1976 }
 0x378   : > { %v1270_v17 = vsel %vm979_vm3, %v2296_v16, 0.0  ;;  %v2310_v34 = vpop.eup %1978 }
 0x379   : > { %820 = vrot.lane.b32.xlu1 %v2272_v14, %s2038_s14  ;;  %v1252_v38 = vsel %vm979_vm3, %v2310_v34, 0.0  ;;  %v2315_v39 = vpop.eup %1980 }
 0x37a   : > { %v1255_v42 = vsel %vm979_vm3, %v2315_v39, 0.0  ;;  %v2319_v43 = vpop.eup %1982 }
 0x37b   : > { %v1258_v46 = vsel %vm979_vm3, %v2319_v43, 0.0  ;;  %v2323_v47 = vpop.eup %1984 }
 0x37c   : > { %v1261_v50 = vsel %vm979_vm3, %v2323_v47, 0.0  ;;  %v2327_v52 = vpop.eup %1986 }
 0x37d   : > { %823 = vrot.lane.b32.xlu1 %v2272_v14, %s2039_s15  ;;  %v1264_v55 = vsel %vm979_vm3, %v2327_v52, 0.0  ;;  %v2331_v56 = vpop.eup %1988 }
 0x37e   : > { %v1267_v60 = vsel %vm979_vm3, %v2331_v56, 0.0 }
 0x381   : > { %826 = vrot.lane.b32.xlu1 %v2272_v14, %s2040_s16 }
 0x385   : > { %830 = vrot.lane.b32.xlu1 %v2278_v15, %s2035_s11 }
 0x389   : > { %833 = vrot.lane.b32.xlu1 %v2278_v15, %s2034_s10 }
 0x38d   : > { %836 = vrot.lane.b32.xlu1 %v2278_v15, %s2036_s12 }
 0x390   : > { %1271 = vadd.xlane.f32.xlu0 %v1270_v17 }
 0x3a6   : > { %845 = vrot.lane.b32.xlu0 %v2278_v15, %s2039_s15 }
 0x3b1   : > { %1226 = vmax.xlane.f32.xlu1 %v1225_v18 }
 0x3c2   : > { %842 = vrot.lane.b32.xlu1 %v2278_v15, %s2038_s14 }
 0x3df   : > { %v809_v32 = vpop.permute.xlu1 %808  ;;  %v818_v61 = vpop.permute.xlu0 %817 }
 0x3e0   : > { %v851_v1 = vcombine.low %v2272_v14, %v818_v61 }
 0x3e2   : > { %v858_v7 = vrot.slane %v851_v1, %v2189_v51 }
 0x3e3   : > { %v812_v35 = vpop.permute.xlu1 %811  ;;  %v840_v62 = vpop.permute.xlu0 %839 }
 0x3e4   : > { %v867_v3 = vcombine.low %v2278_v15, %v840_v62 }
 0x3e6   : > { %1253 = vadd.xlane.f32.xlu1 %v1252_v38  ;;  %v874_v9 = vrot.slane %v867_v3, %v2189_v51 }
 0x3e7   : > { %v815_v40 = vpop.permute.xlu1 %814 }
 0x3ea   : > { %1256 = vadd.xlane.f32.xlu1 %v1255_v42 }
 0x3eb   : > { %v821_v44 = vpop.permute.xlu1 %820 }
 0x3ec   : > { %v901_v45 = vcombine.low %v809_v32, %v821_v44 }
 0x3ee   : > { %1259 = vadd.xlane.f32.xlu1 %v1258_v46  ;;  %v2334_v57 = vrot.slane %v901_v45, %v2189_v51 }
 0x3ef   : > { %v824_v48 = vpop.permute.xlu1 %823 }
 0x3f0   : > { %v859_v49 = vcombine.low %v812_v35, %v824_v48 }
 0x3f2   : > { %1262 = vadd.xlane.f32.xlu1 %v1261_v50  ;;  %v866_v29 = vrot.slane %v859_v49, %v2189_v51 }
 0x3f3   : > { %v827_v53 = vpop.permute.xlu1 %826 }
 0x3f4   : > { %v909_v54 = vcombine.low %v815_v40, %v827_v53  ;;  %v883_v10 = vcombine.low %v858_v7, %v866_v29 }
 0x3f6   : > { %v2337_v58 = vrot.slane %v909_v54, %v2189_v51  ;;  %1265 = vadd.xlane.f32.xlu1 %v1264_v55  ;;  %v890_v30 = vrot.slane %v883_v10, %v2197_v5 }
 0x3f7   : > { %v831_v63 = vpop.permute.xlu1 %830 }
 0x3f8   : > { %v933_v59 = vcombine.low %v2334_v57, %v2337_v58 }
 0x3fa   : > { %1268 = vadd.xlane.f32.xlu1 %v1267_v60  ;;  %v940_v54 = vrot.slane %v933_v59, %v2197_v5 }
 0x3fb   : > { %v834_v4 = vpop.permute.xlu1 %833 }
 0x3ff   : > { %v837_v24 = vpop.permute.xlu1 %836 }
 0x41d   : > { %v1272_v0 = vpop.xlane.xlu0 %1271 }
 0x421   : > { %v846_v6 = vpop.permute.xlu0 %845 }
 0x422   : > { %v875_v8 = vcombine.low %v834_v4, %v846_v6 }
 0x424   : > { %v882_v11 = vrot.slane %v875_v8, %v2189_v51 }
 0x426   : > { %v891_v12 = vcombine.low %v874_v9, %v882_v11 }
 0x428   : > { %v898_v13 = vrot.slane %v891_v12, %v2197_v5 }
 0x42a   : > { %v2351_v14 = vcombine.low %v890_v30, %v898_v13  ;;  %v2353_v21 = vcombine.high %v890_v30, %v898_v13 }
 0x42c   : > { %v960_v1 = vshrl.u32 %v2353_v21, 16 }
 0x43e   : > { %v1227_v17 = vpop.xlane.xlu1 %1226 }
 0x43f   : > { %v1235_v18 = vsub.f32 %v2262_v2, %v1227_v17 }
 0x441   : > { %v1250_v19 = vmul.f32 1.442695, %v1235_v18 }
 0x442   : > { %v843_v23 = vpop.permute.xlu1 %842 }
 0x443   : > { %1990 = vpow2.f32 %v1250_v19 }
 0x44d   : > { %v1991_v20 = vpop.eup %1990 }
 0x44e   : > { %v1273_v22 = vsel %vm979_vm3, %v1991_v20, 0.0 }
 0x44f   : > { %1274 = vadd.xlane.f32.xlu1 %v1273_v22 }
 0x460   : > { %848 = vrot.lane.b32.xlu1 %v2278_v15, %s2040_s16 }
 0x473   : > { %v1254_v25 = vpop.xlane.xlu1 %1253 }
 0x474   : > { %1992 = vrcp.f32 %v1254_v25 }
 0x477   : > { %v1257_v26 = vpop.xlane.xlu1 %1256 }
 0x478   : > { %1994 = vrcp.f32 %v1257_v26 }
 0x47b   : > { %v1260_v27 = vpop.xlane.xlu1 %1259 }
 0x47c   : > { %1996 = vrcp.f32 %v1260_v27 }
 0x47e   : > { %v1993_v32 = vpop.eup %1992 }
 0x47f   : > { %v1263_v28 = vpop.xlane.xlu1 %1262  ;;  %v1284_v33 = vmul.f32 %v1993_v32, %v2310_v34 }
 0x480   : > { %1998 = vrcp.f32 %v1263_v28 }
 0x482   : > { %v1995_v2 = vpop.eup %1994 }
 0x483   : > { %v1285_v35 = vmul.f32 %v1995_v2, %v2315_v39  ;;  %v1266_v42 = vpop.xlane.xlu1 %1265  ;;  %v917_v39 = vcombine.low %v831_v63, %v843_v23 }
 0x485   : > { %v1292_v36 = vpack.c.bf16 %v1285_v35, %v1284_v33  ;;  %v924_v48 = vrot.slane %v917_v39, %v2189_v51 }
 0x486   : > { %v1997_v37 = vpop.eup %1996 }
 0x487   : > { %1913 = vmatpush3.bf16.msra.mxu0 %v1292_v36  ;;  %v1286_v38 = vmul.f32 %v1997_v37, %v2319_v43  ;;  %v1269_v44 = vpop.xlane.xlu1 %1268 }
 0x488   : > { %1924 = vmatprep.subr.bf16.mxu0 %v2041_v31  ;;  %2000 = vrcp.f32 %v1269_v44 }
 0x489   : > { %2002 = vrcp.f32 %v1266_v42 }
 0x48a   : > { %v1999_v15 = vpop.eup %1998 }
 0x48b   : > { %v1287_v40 = vmul.f32 %v1999_v15, %v2323_v47 }
 0x48d   : > { %v1293_v41 = vpack.c.bf16 %v1287_v40, %v1286_v38 }
 0x48f   : > { %1919 = vmatpush3.bf16.msra.mxu1 %v1293_v41 }
 0x490   : > { %1930 = vmatprep.subr.bf16.mxu1 %v2041_v31 }
 0x492   : > { %v2001_v49 = vpop.eup %2000 }
 0x493   : > { %v2003_v50 = vpop.eup %2002  ;;  %v1289_v60 = vmul.f32 %v2001_v49, %v2331_v56 }
 0x494   : > { %v1288_v3 = vmul.f32 %v2003_v50, %v2327_v52 }
 0x496   : > { %v1294_v59 = vpack.c.bf16 %v1289_v60, %v1288_v3 }
 0x4dc   : > { %v1275_v34 = vpop.xlane.xlu1 %1274 }
 0x4dd   : > { %2004 = vrcp.f32 %v1275_v34 }
 0x4de   : > { %2006 = vrcp.f32 %v1272_v0  ;;  %v954_v0 = vshrl.u32 %v2351_v14, 16 }
 0x4e0   : > { %v849_v45 = vpop.permute.xlu1 %848 }
 0x4e1   : > { %v925_v46 = vcombine.low %v837_v24, %v849_v45 }
 0x4e3   : > { %v932_v43 = vrot.slane %v925_v46, %v2189_v51 }
 0x4e5   : > { %v941_v47 = vcombine.low %v924_v48, %v932_v43 }
 0x4e7   : > { %v2005_v53 = vpop.eup %2004  ;;  %v948_v55 = vrot.slane %v941_v47, %v2197_v5 }
 0x4e8   : > { %v2007_v61 = vpop.eup %2006  ;;  %v1291_v29 = vmul.f32 %v2005_v53, %v1991_v20 }
 0x4e9   : > { %v949_v62 = vcombine.low %v940_v54, %v948_v55  ;;  %v950_v63 = vcombine.high %v940_v54, %v948_v55  ;;  %v1290_v7 = vmul.f32 %v2007_v61, %v2296_v16 }
 0x4eb   : > { %v953_v4 = vpack.i.b16 %v949_v62, %v2351_v14  ;;  %v955_v6 = vshrl.u32 %v949_v62, 16  ;;  %v959_v57 = vpack.i.b16 %v950_v63, %v2353_v21  ;;  %v961_v58 = vshrl.u32 %v950_v63, 16 }
 0x4ec   : > { %v1295_v9 = vpack.c.bf16 %v1291_v29, %v1290_v7 }
 0x4ed   : > { %1915 = vmatmul.mubr.msk.bf16.vlgmr.msra.gmra.mrb[12].mxu0 %vm979_vm3, %v953_v4  ;;  %v956_v56 = vpack.i.b16 %v955_v6, %v954_v0  ;;  %v962_v8 = vpack.i.b16 %v961_v58, %v960_v1 }
 0x4ee   : > { %1925 = vmatpush3.bf16.msra.mxu0 %v1294_v59  ;;  %1926 = vmatprep.mubr.msk.bf16.mxu0 %vm2042_vm2, %v2041_v31 }
 0x4ef   : > { %1921 = vmatmul.mubr.msk.bf16.vlgmr.msra.gmra.mrb[12].mxu1 %vm979_vm3, %v956_v56 }
 0x4f0   : > { %1931 = vmatpush3.bf16.msra.mxu1 %v1295_v9  ;;  %1932 = vmatprep.mubr.msk.bf16.mxu1 %vm2042_vm2, %v2041_v31 }
 0x4f5   : > { %1927 = vmatmul.mubr.msk.bf16.vlgmr.msra.gmra.mrb[16].mxu0 %vm979_vm3, %v959_v57 }
 0x4f7   : > { %1933 = vmatmul.mubr.msk.bf16.vlgmr.msra.gmra.mrb[16].mxu1 %vm979_vm3, %v962_v8 }
 0x5c0   : > { %v1333_v16 = vpop.f32.mrb[12].mxu0 }
 0x5c1   : > { %v1916_v52 = vpop.f32.mrb[13].mxu0 }
 0x5c2   : > { %v1336_v10 = vpop.f32.mrb[14].mxu0  ;;  %v1377_v11 = vpop.f32.mrb[12].mxu1 }
 0x5c3   : > { %v1917_v12 = vpop.f32.mrb[15].mxu0  ;;  %v1922_v30 = vpop.f32.mrb[13].mxu1 }
 0x5c4   : > { %v1380_v13 = vpop.f32.mrb[14].mxu1 }
 0x5c5   : > { %v1923_v14 = vpop.f32.mrb[15].mxu1 }
 0x5c8   : > { %v1421_v21 = vpop.f32.mrb[16].mxu0 }
 0x5c9   : > { %v1479_v24 = vcombine.low %v1333_v16, %v1421_v21  ;;  %v1480_v17 = vcombine.high %v1333_v16, %v1421_v21  ;;  %v1928_v18 = vpop.f32.mrb[17].mxu0 }
 0x5ca   : > { %v1424_v19 = vpop.f32.mrb[18].mxu0  ;;  %v1465_v20 = vpop.f32.mrb[16].mxu1 }
 0x5cb   : > { %v1547_v22 = vcombine.low %v1336_v10, %v1424_v19  ;;  %v1548_v23 = vcombine.high %v1336_v10, %v1424_v19  ;;  %v1929_v25 = vpop.f32.mrb[19].mxu0  ;;  %v1934_v26 = vpop.f32.mrb[17].mxu1  ;;  %v1495_v27 = vcombine.low %v1377_v11, %v1465_v20  ;;  %v1496_v28 = vcombine.high %v1377_v11, %v1465_v20 }
 0x5cc   : > { %v1468_v32 = vpop.f32.mrb[18].mxu1  ;;  %v1487_v36 = vrot.slane %v1479_v24, %v2189_v51  ;;  %v1494_v37 = vrot.slane %v1480_v17, %v2189_v51 }
 0x5cd   : > { %v1563_v2 = vcombine.low %v1380_v13, %v1468_v32  ;;  %v1564_v33 = vcombine.high %v1380_v13, %v1468_v32  ;;  %v1935_v35 = vpop.f32.mrb[19].mxu1  ;;  %v1503_v15 = vrot.slane %v1495_v27, %v2189_v51  ;;  %v1510_v38 = vrot.slane %v1496_v28, %v2189_v51 }
 0x5ce   : > { %v1555_v40 = vrot.slane %v1547_v22, %v2189_v51  ;;  %v1562_v41 = vrot.slane %v1548_v23, %v2189_v51 }
 0x5cf   : > { %v1571_v42 = vrot.slane %v1563_v2, %v2189_v51  ;;  %v1578_v44 = vrot.slane %v1564_v33, %v2189_v51  ;;  %v1511_v34 = vcombine.low %v1487_v36, %v1503_v15  ;;  %v1512_v39 = vcombine.high %v1487_v36, %v1503_v15  ;;  %v2008_v2 = vld [vmem:[%s2102_s27] sm:$0xff] }
 0x5d0   : > { %v1527_v45 = vcombine.low %v1494_v37, %v1510_v38  ;;  %v1528_v46 = vcombine.high %v1494_v37, %v1510_v38 }
 0x5d1   : > { %v1579_v48 = vcombine.low %v1555_v40, %v1571_v42  ;;  %v1580_v43 = vcombine.high %v1555_v40, %v1571_v42  ;;  %v1595_v49 = vcombine.low %v1562_v41, %v1578_v44  ;;  %v1596_v47 = vcombine.high %v1562_v41, %v1578_v44 }
 0x5d2   : > { %v1526_v50 = vrot.slane %v1512_v39, %v2197_v5  ;;  %v1535_v54 = vrot.slane %v1527_v45, %v2197_v5  ;;  %v1542_v55 = vrot.slane %v1528_v46, %v2197_v5  ;;  %v1519_v60 = vrot.slane %v1511_v34, %v2197_v5 }
 0x5d3   : > { %v1594_v53 = vrot.slane %v1580_v43, %v2197_v5  ;;  %v1603_v51 = vrot.slane %v1595_v49, %v2197_v5  ;;  %v1610_v61 = vrot.slane %v1596_v47, %v2197_v5  ;;  %v1587_v62 = vrot.slane %v1579_v48, %v2197_v5 }
 0x5d4   : > { %1620 = vrot.lane.b32.xlu0 %v1526_v50, %s2039_s15  ;;  %v1543_v63 = vcombine.high %v1519_v60, %v2041_v31  ;;  %v1544_v1 = vcombine.high %v1526_v50, %v2041_v31  ;;  %v1545_v5 = vcombine.high %v1535_v54, %v2041_v31  ;;  %v1546_v4 = vcombine.high %v1542_v55, %v2041_v31 }
 0x5d5   : > { %1648 = vrot.lane.b32.xlu1 %v1594_v53, %s2039_s15  ;;  %v1611_v0 = vcombine.high %v1587_v62, %v2041_v31  ;;  %v1612_v3 = vcombine.high %v1594_v53, %v2041_v31  ;;  %v1613_v29 = vcombine.high %v1603_v51, %v2041_v31  ;;  %v1614_v6 = vcombine.high %v1610_v61, %v2041_v31 }
 0x5d8   : > { %1628 = vrot.lane.b32.xlu0 %v1535_v54, %s2037_s13 }
 0x5d9   : > { %1656 = vrot.lane.b32.xlu1 %v1603_v51, %s2037_s13 }
 0x5dc   : > { %1636 = vrot.lane.b32.xlu0 %v1542_v55, %s2034_s10 }
 0x5dd   : > { %1664 = vrot.lane.b32.xlu1 %v1610_v61, %s2034_s10 }
 0x5e0   : > { %1616 = vrot.lane.b32.xlu0 %v1543_v63, %s2040_s16 }
 0x5e1   : > { %1644 = vrot.lane.b32.xlu1 %v1611_v0, %s2040_s16 }
 0x5e4   : > { %1624 = vrot.lane.b32.xlu0 %v1544_v1, %s2038_s14 }
 0x5e5   : > { %1652 = vrot.lane.b32.xlu1 %v1612_v3, %s2038_s14 }
 0x5e8   : > { %1632 = vrot.lane.b32.xlu0 %v1545_v5, %s2036_s12 }
 0x5e9   : > { %1660 = vrot.lane.b32.xlu1 %v1613_v29, %s2036_s12 }
 0x5ec   : > { %1640 = vrot.lane.b32.xlu0 %v1546_v4, %s2035_s11 }
 0x5ed   : > { %1668 = vrot.lane.b32.xlu1 %v1614_v6, %s2035_s11 }
 0x646   : > { %v1621_v57 = vpop.permute.xlu0 %1620 }
 0x647   : > { %v1649_v58 = vpop.permute.xlu1 %1648 }
 0x64a   : > { %v1629_v59 = vpop.permute.xlu0 %1628 }
 0x64b   : > { %v1657_v7 = vpop.permute.xlu1 %1656 }
 0x64e   : > { %v1637_v56 = vpop.permute.xlu0 %1636 }
 0x64f   : > { %v1665_v8 = vpop.permute.xlu1 %1664 }
 0x652   : > { %v1617_v9 = vpop.permute.xlu0 %1616 }
 0x653   : > { %v1645_v16 = vpop.permute.xlu1 %1644  ;;  %v1671_v52 = vsel %vm979_vm3, %v1519_v60, %v1617_v9 }
 0x654   : > { %v1684_v10 = vsel %vm979_vm3, %v1587_v62, %v1645_v16  ;;  %v1673_v31 = vsel %vm1672_vm4, %v1671_v52, %v1621_v57 }
 0x655   : > { %v1685_v12 = vsel %vm1672_vm4, %v1684_v10, %v1649_v58 }
 0x656   : > { %v1625_v11 = vpop.permute.xlu0 %1624 }
 0x657   : > { %v1653_v30 = vpop.permute.xlu1 %1652  ;;  %v1675_v13 = vsel %vm1674_vm5, %v1673_v31, %v1625_v11 }
 0x658   : > { %v1686_v14 = vsel %vm1674_vm5, %v1685_v12, %v1653_v30  ;;  %v1677_v24 = vsel %vm1676_vm6, %v1675_v13, %v1629_v59 }
 0x659   : > { %v1687_v17 = vsel %vm1676_vm6, %v1686_v14, %v1657_v7 }
 0x65a   : > { %v1633_v21 = vpop.permute.xlu0 %1632 }
 0x65b   : > { %v1661_v18 = vpop.permute.xlu1 %1660  ;;  %v1679_v19 = vsel %vm1678_vm7, %v1677_v24, %v1633_v21 }
 0x65c   : > { %v1688_v20 = vsel %vm1678_vm7, %v1687_v17, %v1661_v18  ;;  %v1681_v23 = vsel %vm1680_vm8, %v1679_v19, %v1637_v56 }
 0x65d   : > { %v1689_v25 = vsel %vm1680_vm8, %v1688_v20, %v1665_v8 }
 0x65e   : > { %v1641_v22 = vpop.permute.xlu0 %1640 }
 0x65f   : > { %v1669_v26 = vpop.permute.xlu1 %1668  ;;  %v1683_v27 = vsel %vm1682_vm9, %v1681_v23, %v1641_v22 }
 0x660   : > { %v1690_v28 = vsel %vm1682_vm9, %v1689_v25, %v1669_v26 }
 0x661   : > { %v1693_v32 = vcombine.low %v1683_v27, %v1690_v28 }
 0x663   : > { %v1695_v33 = vadd.f32 %v2008_v2, %v1693_v32 }
 0x665   : > { %1696 = vst [vmem:[%s323_s25] sm:$0xff] %v1695_v33 }
 0x666 PF: > { %s15_s20 = sadd.s32 1, %s2031_s20   ;;  %s2447_s18 = smov %s2027_s19 }
 0x667   : > { %p12_p5 = scmp.ge.s32.totalorder %s15_s20, 4   ;;  %s2448_s19 = smov %s2450_s21 }
 0x669   :  { %14 = sbr.rel (!%p12_p5) target bundleno = 2 (0x2), region = 83 }

</bundles_post_ra>
